<compile_context>
chip_gen: v7x
topology: tpu7x:2x2x1
jax: 0.10.0
libtpu: 0.0.40
codegen_flags: <defaults>
</compile_context>

<pallas_src>
import numpy as np
import jax
import jax.numpy as jnp
from jax import lax
from jax.experimental import pallas as pl
from jax.experimental.pallas import tpu as pltpu

# ---------------- model hyper-parameters (args) ----------------
INP_DIM = 3                                   # args.inp_dim
HID_DIM = 32                                  # args.hid_dim
NUM_LAYERS = 2                                # args.num_layers
LD_BIAS = 0.1                                 # args.bias
LOW_DIM = (INP_DIM - 1) * INP_DIM // 2        # strictly-lower-triangular entries = 3
BATCH = 8

HEAD_W = LOW_DIM + 2 * INP_DIM                # fused head width: [lo | ld | g] = 9


def _r8(x):
    return (x + 7) // 8 * 8


# ---- single packed weight slab: every block starts on an 8-row boundary ----
ROW_WPRE = 0                                   # WpreT rows [0, n)
ROW_BPRE = _r8(INP_DIM)                        # bpre   row 8
ROW_WH0 = ROW_BPRE + 8                         # first hidden layer row 16
LAYER_STRIDE = HID_DIM + 8                     # 32 weight rows + bias row + pad = 40
ROW_HEAD_W = ROW_WH0 + NUM_LAYERS * LAYER_STRIDE   # 96  (head weights, 32 rows)
ROW_HEAD_B = ROW_HEAD_W + HID_DIM              # 128 (head bias row)
W_ROWS = _r8(ROW_HEAD_B + 1)                   # 136
W_COLS = HID_DIM                               # 32 >= HEAD_W (head cols 9..31 zero)

# ---- packed, lane-padded output slab [B, 128] = [u(3) | H(9) | c(3) | g(3) | 0-pad] ----
OUT_W = 3 * INP_DIM + INP_DIM * INP_DIM        # 18 meaningful lanes
OUT_PAD = 128                                  # full-lane, unmasked store + DMA
COL_U = 0
COL_H = INP_DIM
COL_C = COL_H + INP_DIM * INP_DIM
COL_G = COL_C + INP_DIM


# ---------------- the fused Pallas kernel ----------------
def delan_kernel(state_ref, w_ref, out_ref):
    n, hid = INP_DIM, HID_DIM
    B = state_ref.shape[0]
    R = (1 + n) * B                            # stacked rows: values + n Jacobian blocks
    f32 = jnp.float32

    state = state_ref[...]                     # [B, 3n]
    q = state[:, :n]
    qdot = state[:, n:2 * n]
    qddot = state[:, 2 * n:3 * n]

    # ---- stacked forward+Jacobian operand: rows [0:B]=q, block k rows = e_k seed ----
    r_seed = lax.broadcasted_iota(jnp.int32, (n * B, n), 0)
    c_seed = lax.broadcasted_iota(jnp.int32, (n * B, n), 1)
    seed = jnp.where((r_seed >= c_seed * B) & (r_seed < (c_seed + 1) * B),
                     1.0, 0.0).astype(f32)                       # [n*B, n]
    xJ = jnp.concatenate([q, seed], axis=0)                      # [R, n]

    # bias applies only to the value rows (Jacobian rows get no bias)
    r_all = lax.broadcasted_iota(jnp.int32, (R, 1), 0)
    is_val = jnp.where(r_all < B, 1.0, 0.0).astype(f32)          # [R, 1]

    def fused_layer(x, w_row, k_rows, b_row):
        WT = w_ref[w_row:w_row + k_rows, :]                      # [k_rows, hid]
        b = w_ref[b_row:b_row + 1, :]                            # [1, hid]
        zall = jnp.dot(x, WT, preferred_element_type=f32)        # [R, hid]
        zb = zall + is_val * b                                   # bias only on value rows
        d = jnp.where(zb[:B, :] > 0, 1.0, 0.01)                  # LeakyReLU'(value rows)
        d_rep = jnp.concatenate([d] * (1 + n), axis=0)           # sublane-replicate d
        return d_rep * zb                                        # fwd rows + chained Jacobian

    xJ = fused_layer(xJ, ROW_WPRE, n, ROW_BPRE)                  # pre layer
    for l in range(NUM_LAYERS):
        base = ROW_WH0 + l * LAYER_STRIDE
        xJ = fused_layer(xJ, base, hid, base + hid)

    # ---- fused heads: one matmul for (lo | ld | g) and all their Jacobian blocks ----
    WheadT = w_ref[ROW_HEAD_W:ROW_HEAD_W + hid, :]               # [hid, 32]; cols>=9 zero
    bhead = w_ref[ROW_HEAD_B:ROW_HEAD_B + 1, :]                  # [1, 32]
    yall = jnp.dot(xJ, WheadT, preferred_element_type=f32)       # [R, 32]
    yv = yall[:B, :] + bhead                                     # value rows (+ bias)

    lo = yv[:, 0:LOW_DIM]
    zld = yv[:, LOW_DIM:LOW_DIM + n]
    g = yv[:, LOW_DIM + n:LOW_DIM + 2 * n]

    # softplus (+ LD_BIAS) and its derivative, sharing one exp; EXACT reciprocal
    e = jnp.exp(-jnp.abs(zld))
    inv = 1.0 / (1.0 + e)
    ld = jnp.maximum(zld, 0.0) + jnp.log(1.0 + e) + LD_BIAS
    sig = jnp.where(zld >= 0, inv, e * inv)                      # d softplus / d zld

    # ---- dynamics assembly, vectorized on [B, n]-wide lane vectors ----
    lane = lax.broadcasted_iota(jnp.int32, (1, n), 1)
    m0 = (lane == 0).astype(f32)
    m1 = (lane == 1).astype(f32)
    m2 = (lane == 2).astype(f32)
    m01 = m0 + m1

    # rows of L = [[ld0,0,0],[lo0,ld1,0],[lo1,lo2,ld2]]  (tril order (1,0),(2,0),(2,1))
    lo_s = yv[:, 1:LOW_DIM + 1]                                  # [lo1, lo2, *]
    L0 = ld * m0
    L1 = lo * m0 + ld * m1
    L2 = lo_s * m01 + ld * m2

    # rows of A_k = dL/dq_k (chain rule through softplus on the diagonal)
    A = []
    for k in range(n):
        yk = yall[(k + 1) * B:(k + 2) * B, :]                    # d(head)/dq_k block
        lok = yk[:, 0:LOW_DIM]
        ldk = sig * yk[:, LOW_DIM:LOW_DIM + n]
        lok_s = yk[:, 1:LOW_DIM + 1]
        A.append((ldk * m0,
                  lok * m0 + ldk * m1,
                  lok_s * m01 + ldk * m2))

    qd = [jnp.broadcast_to(qdot[:, k:k + 1], (B, n)) for k in range(n)]
    qdd = [jnp.broadcast_to(qddot[:, k:k + 1], (B, n)) for k in range(n)]

    # Ldot rows: Ldot_i = sum_k qdot_k * A_k[i]
    Ld0 = qd[0] * A[0][0] + qd[1] * A[1][0] + qd[2] * A[2][0]
    Ld1 = qd[0] * A[0][1] + qd[1] * A[1][1] + qd[2] * A[2][1]
    Ld2 = qd[0] * A[0][2] + qd[1] * A[1][2] + qd[2] * A[2][2]

    # transpose mat-vecs: cheap lane-wide broadcast sums
    w = qd[0] * L0 + qd[1] * L1 + qd[2] * L2                     # L^T qdot
    v = qd[0] * Ld0 + qd[1] * Ld1 + qd[2] * Ld2                  # Ldot^T qdot
    s = qdd[0] * L0 + qdd[1] * L1 + qdd[2] * L2                  # L^T qddot
    Av = [qd[0] * A[k][0] + qd[1] * A[k][1] + qd[2] * A[k][2]    # A_k^T qdot
          for k in range(n)]

    def dot3(a, b):                                              # per-row dot -> [B, 1]
        return jnp.sum(a * b, axis=-1, keepdims=True)

    # H = L L^T (symmetric)
    H00 = dot3(L0, L0); H01 = dot3(L0, L1); H02 = dot3(L0, L2)
    H11 = dot3(L1, L1); H12 = dot3(L1, L2); H22 = dot3(L2, L2)

    # c1 = L v + Ldot w ; H qddot = L s ; c2_k = 2 (A_k^T qdot) . (L^T qdot)
    c1 = jnp.concatenate([dot3(L0, v) + dot3(Ld0, w),
                          dot3(L1, v) + dot3(Ld1, w),
                          dot3(L2, v) + dot3(Ld2, w)], axis=1)
    Hqdd = jnp.concatenate([dot3(L0, s), dot3(L1, s), dot3(L2, s)], axis=1)
    c2 = 2.0 * jnp.concatenate([dot3(Av[0], w), dot3(Av[1], w), dot3(Av[2], w)], axis=1)

    c = c1 - 0.5 * c2
    u = Hqdd + c + g

    # ---- ONE lane-dense, unmasked store of the whole padded output row ----
    pad = jnp.zeros((B, OUT_PAD - OUT_W), f32)
    out_ref[...] = jnp.concatenate(
        [u, H00, H01, H02, H01, H11, H12, H02, H12, H22, c, g, pad], axis=1)


# ---------------- wrapper ----------------
@jax.jit
def delan_forward_pallas(state, wslab):
    B = state.shape[0]
    vmem = pl.BlockSpec(memory_space=pltpu.MemorySpace.VMEM)
    out = pl.pallas_call(
        delan_kernel,
        out_shape=jax.ShapeDtypeStruct((B, OUT_PAD), jnp.float32),
        in_specs=[vmem, vmem],
        out_specs=vmem,
    )(state, wslab)
    u = out[:, COL_U:COL_U + INP_DIM]
    H = out[:, COL_H:COL_H + INP_DIM * INP_DIM].reshape(B, INP_DIM, INP_DIM)
    c = out[:, COL_C:COL_C + INP_DIM]
    g = out[:, COL_G:COL_G + INP_DIM]
    return u, H, c, g


def pack_params(params):
    """Pack the 11 FCNet parameter arrays into ONE sublane-aligned VMEM slab."""
    w = jnp.zeros((W_ROWS, W_COLS), jnp.float32)
    w = w.at[ROW_WPRE:ROW_WPRE + INP_DIM].set(params["WpreT"])
    w = w.at[ROW_BPRE].set(params["bpre"][0])
    for l in range(NUM_LAYERS):
        base = ROW_WH0 + l * LAYER_STRIDE
        w = w.at[base:base + HID_DIM].set(params["WhT"][l])
        w = w.at[base + HID_DIM].set(params["bh"][l, 0])
    wrow = jnp.concatenate([params["WloT"], params["WldT"], params["WgT"]], axis=1)
    brow = jnp.concatenate([params["blo"], params["bld"], params["bg"]], axis=1)
    w = w.at[ROW_HEAD_W:ROW_HEAD_W + HID_DIM, :HEAD_W].set(wrow)
    w = w.at[ROW_HEAD_B, :HEAD_W].set(brow[0])
    return w


def split_states(state):
    n = INP_DIM
    return state[:, :n], state[:, n:2 * n], state[:, 2 * n:3 * n]


# ---------------- pure-JAX reference (autograd Jacobian) for validation -------
def _leaky(x):
    return jnp.where(x > 0, x, 0.01 * x)


def fcnet_ref_single(qv, params):
    x = _leaky(qv @ params["WpreT"] + params["bpre"][0])
    for l in range(NUM_LAYERS):
        x = _leaky(x @ params["WhT"][l] + params["bh"][l, 0])
    lo = x @ params["WloT"] + params["blo"][0]
    zld = x @ params["WldT"] + params["bld"][0]
    ld = jax.nn.softplus(zld) + LD_BIAS
    g = x @ params["WgT"] + params["bg"][0]
    return lo, ld, g


def assemble_dynamics_ref(q, qdot, qddot, lo, ld, g, lo_q, ld_q):
    n = INP_DIM
    B = q.shape[0]
    tril_r, tril_c = np.tril_indices(n, k=-1)
    diag = np.arange(n)

    L = jnp.zeros((B, n, n), jnp.float32)
    L = L.at[:, tril_r, tril_c].set(lo)
    L = L.at[:, diag, diag].set(ld)
    H = L @ jnp.swapaxes(L, -2, -1)

    L_q = jnp.zeros((B, n, n, n), jnp.float32)
    L_q = L_q.at[:, tril_r, tril_c].set(lo_q)
    L_q = L_q.at[:, diag, diag].set(ld_q)

    Ldot = jnp.einsum('bijk,bk->bij', L_q, qdot)
    Hdot = L @ jnp.swapaxes(Ldot, -2, -1) + Ldot @ jnp.swapaxes(L, -2, -1)
    c1 = jnp.einsum('bij,bj->bi', Hdot, qdot)
    mid = (jnp.einsum('bijk,blj->bilk', L_q, L)
           + jnp.einsum('bkjl,bij->bikl', L_q, L))
    c2 = jnp.einsum('bi,bijk,bj->bk', qdot, mid, qdot)
    c = c1 - 0.5 * c2
    u = jnp.einsum('bij,bj->bi', H, qddot) + c + g
    return u, H, c, g


def delan_forward_ref(state, params):
    q, qdot, qddot = split_states(state)
    lo, ld, g = jax.vmap(lambda v: fcnet_ref_single(v, params))(q)
    lo_q = jax.vmap(jax.jacrev(lambda v: fcnet_ref_single(v, params)[0]))(q)
    ld_q = jax.vmap(jax.jacrev(lambda v: fcnet_ref_single(v, params)[1]))(q)
    return assemble_dynamics_ref(q, qdot, qddot, lo, ld, g, lo_q, ld_q)


# ---------------- deterministic parameter init ----------------
def init_params(key):
    def uni(k, shape, fan_in):
        bound = 1.0 / np.sqrt(fan_in)
        return jax.random.uniform(k, shape, jnp.float32, -bound, bound)

    ks = jax.random.split(key, 12)
    params = {
        "WpreT": uni(ks[0], (INP_DIM, HID_DIM), INP_DIM),          # = W_pre.T
        "bpre":  uni(ks[1], (1, HID_DIM), INP_DIM),
        "WhT":   uni(ks[2], (NUM_LAYERS, HID_DIM, HID_DIM), HID_DIM),
        "bh":    uni(ks[3], (NUM_LAYERS, 1, HID_DIM), HID_DIM),
        "WloT":  uni(ks[4], (HID_DIM, LOW_DIM), HID_DIM),
        "blo":   uni(ks[5], (1, LOW_DIM), HID_DIM),
        "WldT":  uni(ks[6], (HID_DIM, INP_DIM), HID_DIM),
        "bld":   uni(ks[7], (1, INP_DIM), HID_DIM),
        "WgT":   uni(ks[8], (HID_DIM, INP_DIM), HID_DIM),
        "bg":    uni(ks[9], (1, INP_DIM), HID_DIM),
    }
    return params


if __name__ == "__main__":
    key = jax.random.PRNGKey(0)
    pkey, skey = jax.random.split(key)
    params = init_params(pkey)
    state = jax.random.normal(skey, (BATCH, 3 * INP_DIM), jnp.float32)

    wslab = pack_params(params)
    u, H, c, g = delan_forward_pallas(state, wslab)
    jax.block_until_ready((u, H, c, g))

    # sanity check against a pure-JAX autograd reference
    u_r, H_r, c_r, g_r = delan_forward_ref(state, params)
    for a, b in ((u, u_r), (H, H_r), (c, c_r), (g, g_r)):
        err = float(jnp.max(jnp.abs(a - b)))
        # tolerance dominated by default-precision f32 MXU matmuls vs XLA's
        assert err < 1e-2, f"mismatch vs reference: {err}"

    print("KERNEL_OK")
</pallas_src>

<mosaic_0001>
module attributes {stable_mosaic.version = 11 : i64} {
  func.func @delan_kernel(%arg0: memref<8x9xf32, #tpu.memory_space<vmem>>, %arg1: memref<136x32xf32, #tpu.memory_space<vmem>>, %arg2: memref<8x128xf32, #tpu.memory_space<vmem>>) attributes {dimension_semantics = [], scalar_prefetch = 0 : i64, scratch_operands = 0 : i64, tpu.core_type = #tpu.core_type<tc>} {
    %c0 = arith.constant 0 : index
    %c0_0 = arith.constant 0 : index
    %0 = vector.load %arg0[%c0, %c0_0] : memref<8x9xf32, #tpu.memory_space<vmem>>, vector<8x9xf32>
    %1 = vector.extract_strided_slice %0 {offsets = [0, 0], sizes = [8, 3], strides = [1, 1]} : vector<8x9xf32> to vector<8x3xf32>
    %2 = vector.extract_strided_slice %0 {offsets = [0, 3], sizes = [8, 3], strides = [1, 1]} : vector<8x9xf32> to vector<8x3xf32>
    %3 = vector.extract_strided_slice %0 {offsets = [0, 6], sizes = [8, 3], strides = [1, 1]} : vector<8x9xf32> to vector<8x3xf32>
    %4 = tpu.iota {dimensions = array<i32: 0>} : vector<24x3xi32>
    %5 = tpu.iota {dimensions = array<i32: 1>} : vector<24x3xi32>
    %c8_i32 = arith.constant 8 : i32
    %6 = vector.broadcast %c8_i32 : i32 to vector<24x3xi32>
    %7 = arith.muli %5, %6 : vector<24x3xi32>
    %8 = arith.cmpi sge, %4, %7 : vector<24x3xi32>
    %c1_i32 = arith.constant 1 : i32
    %9 = vector.broadcast %c1_i32 : i32 to vector<24x3xi32>
    %10 = arith.addi %5, %9 : vector<24x3xi32>
    %c8_i32_1 = arith.constant 8 : i32
    %11 = vector.broadcast %c8_i32_1 : i32 to vector<24x3xi32>
    %12 = arith.muli %10, %11 : vector<24x3xi32>
    %13 = arith.cmpi slt, %4, %12 : vector<24x3xi32>
    %14 = arith.andi %8, %13 : vector<24x3xi1>
    %cst = arith.constant 1.000000e+00 : f32
    %cst_2 = arith.constant 0.000000e+00 : f32
    %15 = vector.broadcast %cst : f32 to vector<24x3xf32>
    %16 = vector.broadcast %cst_2 : f32 to vector<24x3xf32>
    %17 = arith.select %14, %15, %16 : vector<24x3xi1>, vector<24x3xf32>
    %18 = tpu.concatenate %1, %17 in 0 : vector<8x3xf32>, vector<24x3xf32> -> vector<32x3xf32>
    %19 = tpu.iota {dimensions = array<i32: 0>} : vector<32x1xi32>
    %c8_i32_3 = arith.constant 8 : i32
    %20 = vector.broadcast %c8_i32_3 : i32 to vector<32x1xi32>
    %21 = arith.cmpi slt, %19, %20 : vector<32x1xi32>
    %cst_4 = arith.constant 1.000000e+00 : f32
    %cst_5 = arith.constant 0.000000e+00 : f32
    %22 = vector.broadcast %cst_4 : f32 to vector<32x1xf32>
    %23 = vector.broadcast %cst_5 : f32 to vector<32x1xf32>
    %24 = arith.select %21, %22, %23 : vector<32x1xi1>, vector<32x1xf32>
    %c0_6 = arith.constant 0 : index
    %c0_7 = arith.constant 0 : index
    %25 = vector.load %arg1[%c0_6, %c0_7] : memref<136x32xf32, #tpu.memory_space<vmem>>, vector<3x32xf32>
    %c8 = arith.constant 8 : index
    %c0_8 = arith.constant 0 : index
    %26 = vector.load %arg1[%c8, %c0_8] : memref<136x32xf32, #tpu.memory_space<vmem>>, vector<1x32xf32>
    %cst_9 = arith.constant dense<0.000000e+00> : vector<32x32xf32>
    %27 = tpu.matmul %18, %25, %cst_9 {dimension_numbers = #tpu.dot_dimension_numbers<[1], [0], [0], [1], [0, 0, 1, 1], [], []>} : vector<32x3xf32>, vector<3x32xf32>, vector<32x32xf32> -> vector<32x32xf32>
    %28 = vector.broadcast %24 : vector<32x1xf32> to vector<32x32xf32>
    %29 = vector.broadcast %26 : vector<1x32xf32> to vector<32x32xf32>
    %30 = arith.mulf %28, %29 : vector<32x32xf32>
    %31 = arith.addf %27, %30 : vector<32x32xf32>
    %32 = vector.extract_strided_slice %31 {offsets = [0, 0], sizes = [8, 32], strides = [1, 1]} : vector<32x32xf32> to vector<8x32xf32>
    %cst_10 = arith.constant 0.000000e+00 : f32
    %33 = vector.broadcast %cst_10 : f32 to vector<8x32xf32>
    %34 = arith.cmpf ogt, %32, %33 : vector<8x32xf32>
    %cst_11 = arith.constant 1.000000e+00 : f32
    %cst_12 = arith.constant 0.00999999977 : f32
    %35 = vector.broadcast %cst_11 : f32 to vector<8x32xf32>
    %36 = vector.broadcast %cst_12 : f32 to vector<8x32xf32>
    %37 = arith.select %34, %35, %36 : vector<8x32xi1>, vector<8x32xf32>
    %38 = tpu.concatenate %37, %37, %37, %37 in 0 : vector<8x32xf32>, vector<8x32xf32>, vector<8x32xf32>, vector<8x32xf32> -> vector<32x32xf32>
    %39 = arith.mulf %38, %31 : vector<32x32xf32>
    %c16 = arith.constant 16 : index
    %c0_13 = arith.constant 0 : index
    %40 = vector.load %arg1[%c16, %c0_13] : memref<136x32xf32, #tpu.memory_space<vmem>>, vector<32x32xf32>
    %c48 = arith.constant 48 : index
    %c0_14 = arith.constant 0 : index
    %41 = vector.load %arg1[%c48, %c0_14] : memref<136x32xf32, #tpu.memory_space<vmem>>, vector<1x32xf32>
    %cst_15 = arith.constant dense<0.000000e+00> : vector<32x32xf32>
    %42 = tpu.matmul %39, %40, %cst_15 {dimension_numbers = #tpu.dot_dimension_numbers<[1], [0], [0], [1], [0, 0, 1, 1], [], []>} : vector<32x32xf32>, vector<32x32xf32>, vector<32x32xf32> -> vector<32x32xf32>
    %43 = vector.broadcast %24 : vector<32x1xf32> to vector<32x32xf32>
    %44 = vector.broadcast %41 : vector<1x32xf32> to vector<32x32xf32>
    %45 = arith.mulf %43, %44 : vector<32x32xf32>
    %46 = arith.addf %42, %45 : vector<32x32xf32>
    %47 = vector.extract_strided_slice %46 {offsets = [0, 0], sizes = [8, 32], strides = [1, 1]} : vector<32x32xf32> to vector<8x32xf32>
    %cst_16 = arith.constant 0.000000e+00 : f32
    %48 = vector.broadcast %cst_16 : f32 to vector<8x32xf32>
    %49 = arith.cmpf ogt, %47, %48 : vector<8x32xf32>
    %cst_17 = arith.constant 1.000000e+00 : f32
    %cst_18 = arith.constant 0.00999999977 : f32
    %50 = vector.broadcast %cst_17 : f32 to vector<8x32xf32>
    %51 = vector.broadcast %cst_18 : f32 to vector<8x32xf32>
    %52 = arith.select %49, %50, %51 : vector<8x32xi1>, vector<8x32xf32>
    %53 = tpu.concatenate %52, %52, %52, %52 in 0 : vector<8x32xf32>, vector<8x32xf32>, vector<8x32xf32>, vector<8x32xf32> -> vector<32x32xf32>
    %54 = arith.mulf %53, %46 : vector<32x32xf32>
    %c56 = arith.constant 56 : index
    %c0_19 = arith.constant 0 : index
    %55 = vector.load %arg1[%c56, %c0_19] : memref<136x32xf32, #tpu.memory_space<vmem>>, vector<32x32xf32>
    %c88 = arith.constant 88 : index
    %c0_20 = arith.constant 0 : index
    %56 = vector.load %arg1[%c88, %c0_20] : memref<136x32xf32, #tpu.memory_space<vmem>>, vector<1x32xf32>
    %cst_21 = arith.constant dense<0.000000e+00> : vector<32x32xf32>
    %57 = tpu.matmul %54, %55, %cst_21 {dimension_numbers = #tpu.dot_dimension_numbers<[1], [0], [0], [1], [0, 0, 1, 1], [], []>} : vector<32x32xf32>, vector<32x32xf32>, vector<32x32xf32> -> vector<32x32xf32>
    %58 = vector.broadcast %24 : vector<32x1xf32> to vector<32x32xf32>
    %59 = vector.broadcast %56 : vector<1x32xf32> to vector<32x32xf32>
    %60 = arith.mulf %58, %59 : vector<32x32xf32>
    %61 = arith.addf %57, %60 : vector<32x32xf32>
    %62 = vector.extract_strided_slice %61 {offsets = [0, 0], sizes = [8, 32], strides = [1, 1]} : vector<32x32xf32> to vector<8x32xf32>
    %cst_22 = arith.constant 0.000000e+00 : f32
    %63 = vector.broadcast %cst_22 : f32 to vector<8x32xf32>
    %64 = arith.cmpf ogt, %62, %63 : vector<8x32xf32>
    %cst_23 = arith.constant 1.000000e+00 : f32
    %cst_24 = arith.constant 0.00999999977 : f32
    %65 = vector.broadcast %cst_23 : f32 to vector<8x32xf32>
    %66 = vector.broadcast %cst_24 : f32 to vector<8x32xf32>
    %67 = arith.select %64, %65, %66 : vector<8x32xi1>, vector<8x32xf32>
    %68 = tpu.concatenate %67, %67, %67, %67 in 0 : vector<8x32xf32>, vector<8x32xf32>, vector<8x32xf32>, vector<8x32xf32> -> vector<32x32xf32>
    %69 = arith.mulf %68, %61 : vector<32x32xf32>
    %c96 = arith.constant 96 : index
    %c0_25 = arith.constant 0 : index
    %70 = vector.load %arg1[%c96, %c0_25] : memref<136x32xf32, #tpu.memory_space<vmem>>, vector<32x32xf32>
    %c128 = arith.constant 128 : index
    %c0_26 = arith.constant 0 : index
    %71 = vector.load %arg1[%c128, %c0_26] : memref<136x32xf32, #tpu.memory_space<vmem>>, vector<1x32xf32>
    %cst_27 = arith.constant dense<0.000000e+00> : vector<32x32xf32>
    %72 = tpu.matmul %69, %70, %cst_27 {dimension_numbers = #tpu.dot_dimension_numbers<[1], [0], [0], [1], [0, 0, 1, 1], [], []>} : vector<32x32xf32>, vector<32x32xf32>, vector<32x32xf32> -> vector<32x32xf32>
    %73 = vector.extract_strided_slice %72 {offsets = [0, 0], sizes = [8, 32], strides = [1, 1]} : vector<32x32xf32> to vector<8x32xf32>
    %74 = vector.broadcast %71 : vector<1x32xf32> to vector<8x32xf32>
    %75 = arith.addf %73, %74 : vector<8x32xf32>
    %76 = vector.extract_strided_slice %75 {offsets = [0, 0], sizes = [8, 3], strides = [1, 1]} : vector<8x32xf32> to vector<8x3xf32>
    %77 = vector.extract_strided_slice %75 {offsets = [0, 3], sizes = [8, 3], strides = [1, 1]} : vector<8x32xf32> to vector<8x3xf32>
    %78 = vector.extract_strided_slice %75 {offsets = [0, 6], sizes = [8, 3], strides = [1, 1]} : vector<8x32xf32> to vector<8x3xf32>
    %79 = math.absf %77 : vector<8x3xf32>
    %cst_28 = arith.constant 0.000000e+00 : f32
    %80 = vector.broadcast %cst_28 : f32 to vector<8x3xf32>
    %81 = arith.subf %80, %79 : vector<8x3xf32>
    %82 = math.exp %81 : vector<8x3xf32>
    %cst_29 = arith.constant 1.000000e+00 : f32
    %83 = vector.broadcast %cst_29 : f32 to vector<8x3xf32>
    %84 = arith.addf %83, %82 : vector<8x3xf32>
    %cst_30 = arith.constant 1.000000e+00 : f32
    %85 = vector.broadcast %cst_30 : f32 to vector<8x3xf32>
    %86 = arith.divf %85, %84 : vector<8x3xf32>
    %cst_31 = arith.constant 0.000000e+00 : f32
    %87 = vector.broadcast %cst_31 : f32 to vector<8x3xf32>
    %88 = arith.maximumf %77, %87 : vector<8x3xf32>
    %cst_32 = arith.constant 1.000000e+00 : f32
    %89 = vector.broadcast %cst_32 : f32 to vector<8x3xf32>
    %90 = arith.addf %89, %82 : vector<8x3xf32>
    %91 = math.log %90 : vector<8x3xf32>
    %92 = arith.addf %88, %91 : vector<8x3xf32>
    %cst_33 = arith.constant 1.000000e-01 : f32
    %93 = vector.broadcast %cst_33 : f32 to vector<8x3xf32>
    %94 = arith.addf %92, %93 : vector<8x3xf32>
    %cst_34 = arith.constant 0.000000e+00 : f32
    %95 = vector.broadcast %cst_34 : f32 to vector<8x3xf32>
    %96 = arith.cmpf oge, %77, %95 : vector<8x3xf32>
    %97 = arith.mulf %82, %86 : vector<8x3xf32>
    %98 = arith.select %96, %86, %97 : vector<8x3xi1>, vector<8x3xf32>
    %99 = tpu.iota {dimensions = array<i32: 1>} : vector<1x3xi32>
    %c0_i32 = arith.constant 0 : i32
    %100 = vector.broadcast %c0_i32 : i32 to vector<1x3xi32>
    %101 = arith.cmpi eq, %99, %100 : vector<1x3xi32>
    %102 = arith.extui %101 : vector<1x3xi1> to vector<1x3xi32>
    %103 = arith.sitofp %102 : vector<1x3xi32> to vector<1x3xf32>
    %c1_i32_35 = arith.constant 1 : i32
    %104 = vector.broadcast %c1_i32_35 : i32 to vector<1x3xi32>
    %105 = arith.cmpi eq, %99, %104 : vector<1x3xi32>
    %106 = arith.extui %105 : vector<1x3xi1> to vector<1x3xi32>
    %107 = arith.sitofp %106 : vector<1x3xi32> to vector<1x3xf32>
    %c2_i32 = arith.constant 2 : i32
    %108 = vector.broadcast %c2_i32 : i32 to vector<1x3xi32>
    %109 = arith.cmpi eq, %99, %108 : vector<1x3xi32>
    %110 = arith.extui %109 : vector<1x3xi1> to vector<1x3xi32>
    %111 = arith.sitofp %110 : vector<1x3xi32> to vector<1x3xf32>
    %112 = arith.addf %103, %107 : vector<1x3xf32>
    %113 = vector.extract_strided_slice %75 {offsets = [0, 1], sizes = [8, 3], strides = [1, 1]} : vector<8x32xf32> to vector<8x3xf32>
    %114 = vector.broadcast %103 : vector<1x3xf32> to vector<8x3xf32>
    %115 = arith.mulf %94, %114 : vector<8x3xf32>
    %116 = vector.broadcast %103 : vector<1x3xf32> to vector<8x3xf32>
    %117 = arith.mulf %76, %116 : vector<8x3xf32>
    %118 = vector.broadcast %107 : vector<1x3xf32> to vector<8x3xf32>
    %119 = arith.mulf %94, %118 : vector<8x3xf32>
    %120 = arith.addf %117, %119 : vector<8x3xf32>
    %121 = vector.broadcast %112 : vector<1x3xf32> to vector<8x3xf32>
    %122 = arith.mulf %113, %121 : vector<8x3xf32>
    %123 = vector.broadcast %111 : vector<1x3xf32> to vector<8x3xf32>
    %124 = arith.mulf %94, %123 : vector<8x3xf32>
    %125 = arith.addf %122, %124 : vector<8x3xf32>
    %126 = vector.extract_strided_slice %72 {offsets = [8, 0], sizes = [8, 32], strides = [1, 1]} : vector<32x32xf32> to vector<8x32xf32>
    %127 = vector.extract_strided_slice %126 {offsets = [0, 0], sizes = [8, 3], strides = [1, 1]} : vector<8x32xf32> to vector<8x3xf32>
    %128 = vector.extract_strided_slice %126 {offsets = [0, 3], sizes = [8, 3], strides = [1, 1]} : vector<8x32xf32> to vector<8x3xf32>
    %129 = arith.mulf %98, %128 : vector<8x3xf32>
    %130 = vector.extract_strided_slice %126 {offsets = [0, 1], sizes = [8, 3], strides = [1, 1]} : vector<8x32xf32> to vector<8x3xf32>
    %131 = vector.broadcast %103 : vector<1x3xf32> to vector<8x3xf32>
    %132 = arith.mulf %129, %131 : vector<8x3xf32>
    %133 = vector.broadcast %103 : vector<1x3xf32> to vector<8x3xf32>
    %134 = arith.mulf %127, %133 : vector<8x3xf32>
    %135 = vector.broadcast %107 : vector<1x3xf32> to vector<8x3xf32>
    %136 = arith.mulf %129, %135 : vector<8x3xf32>
    %137 = arith.addf %134, %136 : vector<8x3xf32>
    %138 = vector.broadcast %112 : vector<1x3xf32> to vector<8x3xf32>
    %139 = arith.mulf %130, %138 : vector<8x3xf32>
    %140 = vector.broadcast %111 : vector<1x3xf32> to vector<8x3xf32>
    %141 = arith.mulf %129, %140 : vector<8x3xf32>
    %142 = arith.addf %139, %141 : vector<8x3xf32>
    %143 = vector.extract_strided_slice %72 {offsets = [16, 0], sizes = [8, 32], strides = [1, 1]} : vector<32x32xf32> to vector<8x32xf32>
    %144 = vector.extract_strided_slice %143 {offsets = [0, 0], sizes = [8, 3], strides = [1, 1]} : vector<8x32xf32> to vector<8x3xf32>
    %145 = vector.extract_strided_slice %143 {offsets = [0, 3], sizes = [8, 3], strides = [1, 1]} : vector<8x32xf32> to vector<8x3xf32>
    %146 = arith.mulf %98, %145 : vector<8x3xf32>
    %147 = vector.extract_strided_slice %143 {offsets = [0, 1], sizes = [8, 3], strides = [1, 1]} : vector<8x32xf32> to vector<8x3xf32>
    %148 = vector.broadcast %103 : vector<1x3xf32> to vector<8x3xf32>
    %149 = arith.mulf %146, %148 : vector<8x3xf32>
    %150 = vector.broadcast %103 : vector<1x3xf32> to vector<8x3xf32>
    %151 = arith.mulf %144, %150 : vector<8x3xf32>
    %152 = vector.broadcast %107 : vector<1x3xf32> to vector<8x3xf32>
    %153 = arith.mulf %146, %152 : vector<8x3xf32>
    %154 = arith.addf %151, %153 : vector<8x3xf32>
    %155 = vector.broadcast %112 : vector<1x3xf32> to vector<8x3xf32>
    %156 = arith.mulf %147, %155 : vector<8x3xf32>
    %157 = vector.broadcast %111 : vector<1x3xf32> to vector<8x3xf32>
    %158 = arith.mulf %146, %157 : vector<8x3xf32>
    %159 = arith.addf %156, %158 : vector<8x3xf32>
    %160 = vector.extract_strided_slice %72 {offsets = [24, 0], sizes = [8, 32], strides = [1, 1]} : vector<32x32xf32> to vector<8x32xf32>
    %161 = vector.extract_strided_slice %160 {offsets = [0, 0], sizes = [8, 3], strides = [1, 1]} : vector<8x32xf32> to vector<8x3xf32>
    %162 = vector.extract_strided_slice %160 {offsets = [0, 3], sizes = [8, 3], strides = [1, 1]} : vector<8x32xf32> to vector<8x3xf32>
    %163 = arith.mulf %98, %162 : vector<8x3xf32>
    %164 = vector.extract_strided_slice %160 {offsets = [0, 1], sizes = [8, 3], strides = [1, 1]} : vector<8x32xf32> to vector<8x3xf32>
    %165 = vector.broadcast %103 : vector<1x3xf32> to vector<8x3xf32>
    %166 = arith.mulf %163, %165 : vector<8x3xf32>
    %167 = vector.broadcast %103 : vector<1x3xf32> to vector<8x3xf32>
    %168 = arith.mulf %161, %167 : vector<8x3xf32>
    %169 = vector.broadcast %107 : vector<1x3xf32> to vector<8x3xf32>
    %170 = arith.mulf %163, %169 : vector<8x3xf32>
    %171 = arith.addf %168, %170 : vector<8x3xf32>
    %172 = vector.broadcast %112 : vector<1x3xf32> to vector<8x3xf32>
    %173 = arith.mulf %164, %172 : vector<8x3xf32>
    %174 = vector.broadcast %111 : vector<1x3xf32> to vector<8x3xf32>
    %175 = arith.mulf %163, %174 : vector<8x3xf32>
    %176 = arith.addf %173, %175 : vector<8x3xf32>
    %177 = vector.extract_strided_slice %2 {offsets = [0, 0], sizes = [8, 1], strides = [1, 1]} : vector<8x3xf32> to vector<8x1xf32>
    %178 = vector.shape_cast %177 : vector<8x1xf32> to vector<8x1xf32>
    %179 = vector.broadcast %178 : vector<8x1xf32> to vector<8x3xf32>
    %180 = vector.extract_strided_slice %2 {offsets = [0, 1], sizes = [8, 1], strides = [1, 1]} : vector<8x3xf32> to vector<8x1xf32>
    %181 = vector.shape_cast %180 : vector<8x1xf32> to vector<8x1xf32>
    %182 = vector.broadcast %181 : vector<8x1xf32> to vector<8x3xf32>
    %183 = vector.extract_strided_slice %2 {offsets = [0, 2], sizes = [8, 1], strides = [1, 1]} : vector<8x3xf32> to vector<8x1xf32>
    %184 = vector.shape_cast %183 : vector<8x1xf32> to vector<8x1xf32>
    %185 = vector.broadcast %184 : vector<8x1xf32> to vector<8x3xf32>
    %186 = vector.extract_strided_slice %3 {offsets = [0, 0], sizes = [8, 1], strides = [1, 1]} : vector<8x3xf32> to vector<8x1xf32>
    %187 = vector.shape_cast %186 : vector<8x1xf32> to vector<8x1xf32>
    %188 = vector.broadcast %187 : vector<8x1xf32> to vector<8x3xf32>
    %189 = vector.extract_strided_slice %3 {offsets = [0, 1], sizes = [8, 1], strides = [1, 1]} : vector<8x3xf32> to vector<8x1xf32>
    %190 = vector.shape_cast %189 : vector<8x1xf32> to vector<8x1xf32>
    %191 = vector.broadcast %190 : vector<8x1xf32> to vector<8x3xf32>
    %192 = vector.extract_strided_slice %3 {offsets = [0, 2], sizes = [8, 1], strides = [1, 1]} : vector<8x3xf32> to vector<8x1xf32>
    %193 = vector.shape_cast %192 : vector<8x1xf32> to vector<8x1xf32>
    %194 = vector.broadcast %193 : vector<8x1xf32> to vector<8x3xf32>
    %195 = arith.mulf %179, %132 : vector<8x3xf32>
    %196 = arith.mulf %182, %149 : vector<8x3xf32>
    %197 = arith.addf %195, %196 : vector<8x3xf32>
    %198 = arith.mulf %185, %166 : vector<8x3xf32>
    %199 = arith.addf %197, %198 : vector<8x3xf32>
    %200 = arith.mulf %179, %137 : vector<8x3xf32>
    %201 = arith.mulf %182, %154 : vector<8x3xf32>
    %202 = arith.addf %200, %201 : vector<8x3xf32>
    %203 = arith.mulf %185, %171 : vector<8x3xf32>
    %204 = arith.addf %202, %203 : vector<8x3xf32>
    %205 = arith.mulf %179, %142 : vector<8x3xf32>
    %206 = arith.mulf %182, %159 : vector<8x3xf32>
    %207 = arith.addf %205, %206 : vector<8x3xf32>
    %208 = arith.mulf %185, %176 : vector<8x3xf32>
    %209 = arith.addf %207, %208 : vector<8x3xf32>
    %210 = arith.mulf %179, %115 : vector<8x3xf32>
    %211 = arith.mulf %182, %120 : vector<8x3xf32>
    %212 = arith.addf %210, %211 : vector<8x3xf32>
    %213 = arith.mulf %185, %125 : vector<8x3xf32>
    %214 = arith.addf %212, %213 : vector<8x3xf32>
    %215 = arith.mulf %179, %199 : vector<8x3xf32>
    %216 = arith.mulf %182, %204 : vector<8x3xf32>
    %217 = arith.addf %215, %216 : vector<8x3xf32>
    %218 = arith.mulf %185, %209 : vector<8x3xf32>
    %219 = arith.addf %217, %218 : vector<8x3xf32>
    %220 = arith.mulf %188, %115 : vector<8x3xf32>
    %221 = arith.mulf %191, %120 : vector<8x3xf32>
    %222 = arith.addf %220, %221 : vector<8x3xf32>
    %223 = arith.mulf %194, %125 : vector<8x3xf32>
    %224 = arith.addf %222, %223 : vector<8x3xf32>
    %225 = arith.mulf %179, %132 : vector<8x3xf32>
    %226 = arith.mulf %182, %137 : vector<8x3xf32>
    %227 = arith.addf %225, %226 : vector<8x3xf32>
    %228 = arith.mulf %185, %142 : vector<8x3xf32>
    %229 = arith.addf %227, %228 : vector<8x3xf32>
    %230 = arith.mulf %179, %149 : vector<8x3xf32>
    %231 = arith.mulf %182, %154 : vector<8x3xf32>
    %232 = arith.addf %230, %231 : vector<8x3xf32>
    %233 = arith.mulf %185, %159 : vector<8x3xf32>
    %234 = arith.addf %232, %233 : vector<8x3xf32>
    %235 = arith.mulf %179, %166 : vector<8x3xf32>
    %236 = arith.mulf %182, %171 : vector<8x3xf32>
    %237 = arith.addf %235, %236 : vector<8x3xf32>
    %238 = arith.mulf %185, %176 : vector<8x3xf32>
    %239 = arith.addf %237, %238 : vector<8x3xf32>
    %240 = arith.mulf %115, %115 : vector<8x3xf32>
    %cst_36 = arith.constant dense<0.000000e+00> : vector<8xf32>
    %241 = vector.multi_reduction <add>, %240, %cst_36 [1] : vector<8x3xf32> to vector<8xf32>
    %242 = vector.shape_cast %241 : vector<8xf32> to vector<8x1xf32>
    %243 = arith.mulf %115, %120 : vector<8x3xf32>
    %cst_37 = arith.constant dense<0.000000e+00> : vector<8xf32>
    %244 = vector.multi_reduction <add>, %243, %cst_37 [1] : vector<8x3xf32> to vector<8xf32>
    %245 = vector.shape_cast %244 : vector<8xf32> to vector<8x1xf32>
    %246 = arith.mulf %115, %125 : vector<8x3xf32>
    %cst_38 = arith.constant dense<0.000000e+00> : vector<8xf32>
    %247 = vector.multi_reduction <add>, %246, %cst_38 [1] : vector<8x3xf32> to vector<8xf32>
    %248 = vector.shape_cast %247 : vector<8xf32> to vector<8x1xf32>
    %249 = arith.mulf %120, %120 : vector<8x3xf32>
    %cst_39 = arith.constant dense<0.000000e+00> : vector<8xf32>
    %250 = vector.multi_reduction <add>, %249, %cst_39 [1] : vector<8x3xf32> to vector<8xf32>
    %251 = vector.shape_cast %250 : vector<8xf32> to vector<8x1xf32>
    %252 = arith.mulf %120, %125 : vector<8x3xf32>
    %cst_40 = arith.constant dense<0.000000e+00> : vector<8xf32>
    %253 = vector.multi_reduction <add>, %252, %cst_40 [1] : vector<8x3xf32> to vector<8xf32>
    %254 = vector.shape_cast %253 : vector<8xf32> to vector<8x1xf32>
    %255 = arith.mulf %125, %125 : vector<8x3xf32>
    %cst_41 = arith.constant dense<0.000000e+00> : vector<8xf32>
    %256 = vector.multi_reduction <add>, %255, %cst_41 [1] : vector<8x3xf32> to vector<8xf32>
    %257 = vector.shape_cast %256 : vector<8xf32> to vector<8x1xf32>
    %258 = arith.mulf %115, %219 : vector<8x3xf32>
    %cst_42 = arith.constant dense<0.000000e+00> : vector<8xf32>
    %259 = vector.multi_reduction <add>, %258, %cst_42 [1] : vector<8x3xf32> to vector<8xf32>
    %260 = vector.shape_cast %259 : vector<8xf32> to vector<8x1xf32>
    %261 = arith.mulf %199, %214 : vector<8x3xf32>
    %cst_43 = arith.constant dense<0.000000e+00> : vector<8xf32>
    %262 = vector.multi_reduction <add>, %261, %cst_43 [1] : vector<8x3xf32> to vector<8xf32>
    %263 = vector.shape_cast %262 : vector<8xf32> to vector<8x1xf32>
    %264 = arith.addf %260, %263 : vector<8x1xf32>
    %265 = arith.mulf %120, %219 : vector<8x3xf32>
    %cst_44 = arith.constant dense<0.000000e+00> : vector<8xf32>
    %266 = vector.multi_reduction <add>, %265, %cst_44 [1] : vector<8x3xf32> to vector<8xf32>
    %267 = vector.shape_cast %266 : vector<8xf32> to vector<8x1xf32>
    %268 = arith.mulf %204, %214 : vector<8x3xf32>
    %cst_45 = arith.constant dense<0.000000e+00> : vector<8xf32>
    %269 = vector.multi_reduction <add>, %268, %cst_45 [1] : vector<8x3xf32> to vector<8xf32>
    %270 = vector.shape_cast %269 : vector<8xf32> to vector<8x1xf32>
    %271 = arith.addf %267, %270 : vector<8x1xf32>
    %272 = arith.mulf %125, %219 : vector<8x3xf32>
    %cst_46 = arith.constant dense<0.000000e+00> : vector<8xf32>
    %273 = vector.multi_reduction <add>, %272, %cst_46 [1] : vector<8x3xf32> to vector<8xf32>
    %274 = vector.shape_cast %273 : vector<8xf32> to vector<8x1xf32>
    %275 = arith.mulf %209, %214 : vector<8x3xf32>
    %cst_47 = arith.constant dense<0.000000e+00> : vector<8xf32>
    %276 = vector.multi_reduction <add>, %275, %cst_47 [1] : vector<8x3xf32> to vector<8xf32>
    %277 = vector.shape_cast %276 : vector<8xf32> to vector<8x1xf32>
    %278 = arith.addf %274, %277 : vector<8x1xf32>
    %279 = tpu.concatenate %264, %271, %278 in 1 : vector<8x1xf32>, vector<8x1xf32>, vector<8x1xf32> -> vector<8x3xf32>
    %280 = arith.mulf %115, %224 : vector<8x3xf32>
    %cst_48 = arith.constant dense<0.000000e+00> : vector<8xf32>
    %281 = vector.multi_reduction <add>, %280, %cst_48 [1] : vector<8x3xf32> to vector<8xf32>
    %282 = vector.shape_cast %281 : vector<8xf32> to vector<8x1xf32>
    %283 = arith.mulf %120, %224 : vector<8x3xf32>
    %cst_49 = arith.constant dense<0.000000e+00> : vector<8xf32>
    %284 = vector.multi_reduction <add>, %283, %cst_49 [1] : vector<8x3xf32> to vector<8xf32>
    %285 = vector.shape_cast %284 : vector<8xf32> to vector<8x1xf32>
    %286 = arith.mulf %125, %224 : vector<8x3xf32>
    %cst_50 = arith.constant dense<0.000000e+00> : vector<8xf32>
    %287 = vector.multi_reduction <add>, %286, %cst_50 [1] : vector<8x3xf32> to vector<8xf32>
    %288 = vector.shape_cast %287 : vector<8xf32> to vector<8x1xf32>
    %289 = tpu.concatenate %282, %285, %288 in 1 : vector<8x1xf32>, vector<8x1xf32>, vector<8x1xf32> -> vector<8x3xf32>
    %290 = arith.mulf %229, %214 : vector<8x3xf32>
    %cst_51 = arith.constant dense<0.000000e+00> : vector<8xf32>
    %291 = vector.multi_reduction <add>, %290, %cst_51 [1] : vector<8x3xf32> to vector<8xf32>
    %292 = vector.shape_cast %291 : vector<8xf32> to vector<8x1xf32>
    %293 = arith.mulf %234, %214 : vector<8x3xf32>
    %cst_52 = arith.constant dense<0.000000e+00> : vector<8xf32>
    %294 = vector.multi_reduction <add>, %293, %cst_52 [1] : vector<8x3xf32> to vector<8xf32>
    %295 = vector.shape_cast %294 : vector<8xf32> to vector<8x1xf32>
    %296 = arith.mulf %239, %214 : vector<8x3xf32>
    %cst_53 = arith.constant dense<0.000000e+00> : vector<8xf32>
    %297 = vector.multi_reduction <add>, %296, %cst_53 [1] : vector<8x3xf32> to vector<8xf32>
    %298 = vector.shape_cast %297 : vector<8xf32> to vector<8x1xf32>
    %299 = tpu.concatenate %292, %295, %298 in 1 : vector<8x1xf32>, vector<8x1xf32>, vector<8x1xf32> -> vector<8x3xf32>
    %cst_54 = arith.constant 2.000000e+00 : f32
    %300 = vector.broadcast %cst_54 : f32 to vector<8x3xf32>
    %301 = arith.mulf %300, %299 : vector<8x3xf32>
    %cst_55 = arith.constant 5.000000e-01 : f32
    %302 = vector.broadcast %cst_55 : f32 to vector<8x3xf32>
    %303 = arith.mulf %302, %301 : vector<8x3xf32>
    %304 = arith.subf %279, %303 : vector<8x3xf32>
    %305 = arith.addf %289, %304 : vector<8x3xf32>
    %306 = arith.addf %305, %78 : vector<8x3xf32>
    %cst_56 = arith.constant 0.000000e+00 : f32
    %307 = vector.broadcast %cst_56 : f32 to vector<8x110xf32>
    %308 = tpu.concatenate %306, %242, %245, %248, %245, %251, %254, %248, %254, %257, %304, %78, %307 in 1 : vector<8x3xf32>, vector<8x1xf32>, vector<8x1xf32>, vector<8x1xf32>, vector<8x1xf32>, vector<8x1xf32>, vector<8x1xf32>, vector<8x1xf32>, vector<8x1xf32>, vector<8x1xf32>, vector<8x3xf32>, vector<8x3xf32>, vector<8x110xf32> -> vector<8x128xf32>
    %c0_57 = arith.constant 0 : index
    %c0_58 = arith.constant 0 : index
    %309 = vector.load %arg2[%c0_57, %c0_58] : memref<8x128xf32, #tpu.memory_space<vmem>>, vector<8x128xf32>
    tpu.vector_store %arg2[%c0_57, %c0_58], %308 {strides = array<i32>} : memref<8x128xf32, #tpu.memory_space<vmem>>, vector<8x128xf32>,
    return
  }
}

</mosaic_0001>

<bundles_post_ra>
// kernel: delan_forward_pallas.1
= control target key start
LH: loop header
LB: loop body
LE: loop exit
PB: predicated region body
PF: predicated region fallthrough
CT: control target
= control target key end

     0   :  { %vm65_vm0 = vcmask 1042432   ;;  %vm52_vm1 = vcmask 23552   ;;  %v12_v0 = vlaneseq  ;;  %v1095_v10 = vmov 0.0   ;;  %s1098_s12 = smov 3   ;;  %s1106_s17 = smov 125   ;;  %s1436_s1 = inlined_call_operand.vmem [shape: f32[136,32], index: 1, kind: input, shape index: {}]   ;;  %s1437_s0 = inlined_call_operand.vmem [shape: f32[8,9], index: 0, kind: input, shape index: {}]   ;;  %s1438_s2 = inlined_call_operand.vmem [shape: f32[8,128], index: 2, kind: output, shape index: {}]  }
   0x1   :  { %v42_v1 = vld [vmem:[%s1436_s1] sm:$0x7]  ;;  %v160_v14 = vld [vmem:[%s1436_s1 + $0x10] sm:$0xff]  ;;  %v161_v15 = vld [vmem:[%s1436_s1 + $0x18] sm:$0xff]  ;;  %v1096_v27 = vmov 0.01  }
   0x2   :  { %v1133_v2 = vld [vmem:[%s1437_s0] sm:$0xff]  ;;  %982 = vmatprep.subr.msk.mxu0 %vm65_vm0, %v42_v1  ;;  %v13_v3 = vshrl.u32 %v12_v0, 7  ;;  %v1137_v4 = vand.u32 127, %v12_v0  ;;  %v1032_v16 = vpack.c.bf16 %v161_v15, %v160_v14  ;;  %v163_v18 = vld [vmem:[%s1436_s1 + $0x28] sm:$0xff]  ;;  %vm173_vm12 = vcmask 261120   ;;  %v277_v36 = vld [vmem:[%s1436_s1 + $0x38] sm:$0xff] }
   0x3   :  { %984 = vmatprep.mubr.msk.f32.mxu0 %vm52_vm1, %v1133_v2  ;;  %983 = vmatpush3.msk.msra.mxu0 %vm65_vm0, %v42_v1  ;;  %v162_v17 = vld [vmem:[%s1436_s1 + $0x20] sm:$0xff]  ;;  %v929_v20 = vld [vmem:[%s1436_s1 + $0x8] ss:$0 sm:$0xff]  ;;  %v280_v40 = vld [vmem:[%s1436_s1 + $0x50] sm:$0xff]  ;;  %v1097_v0 = vmov 3   ;;  %s1100_s0 = smov 1  }
   0x4   :  { %v18_v5 = vmul.u32 8, %v1137_v4  ;;  %v22_v6 = vadd.s32 1, %v1137_v4  ;;  %v14_v7 = vadd.s32 8, %v13_v3  ;;  %v15_v8 = vadd.s32 16, %v13_v3  ;;  %1033 = vmatprep.subr.bf16.mxu1 %v1032_v16  ;;  %v278_v37 = vld [vmem:[%s1436_s1 + $0x40] sm:$0xff]  ;;  %v279_v39 = vld [vmem:[%s1436_s1 + $0x48] sm:$0xff]  ;;  %1082 = vset.pattern.permute.xlu1 %v1097_v0 }
   0x5   :  { %1035 = vmatpush3.bf16.msra.mxu1 %v1032_v16  ;;  %v1036_v19 = vpack.c.bf16 %v163_v18, %v162_v17  ;;  %v49_v22 = vmul.f32 0.0, %v929_v20  ;;  %v1040_v38 = vpack.c.bf16 %v278_v37, %v277_v36  ;;  %v1044_v41 = vpack.c.bf16 %v280_v40, %v279_v39  ;;  %v935_v42 = vld [vmem:[%s1436_s1 + $0x30] ss:$0 sm:$0xff]  ;;  %v393_v57 = vld [vmem:[%s1436_s1 + $0x60] sm:$0xff]  ;;  %v394_v58 = vld [vmem:[%s1436_s1 + $0x68] sm:$0xff]  ;;  %s1107_s18 = smov 2  }
   0x6   :  { %vm19_vm2 = vcmp.ge.s32.totalorder %v13_v3, %v18_v5  ;;  %v23_v9 = vmul.u32 8, %v22_v6  ;;  %vm20_vm3 = vcmp.ge.s32.totalorder %v14_v7, %v18_v5  ;;  %vm21_vm6 = vcmp.ge.s32.totalorder %v15_v8, %v18_v5  ;;  %v395_v60 = vld [vmem:[%s1436_s1 + $0x70] sm:$0xff]  ;;  %v396_v61 = vld [vmem:[%s1436_s1 + $0x78] sm:$0xff]  ;;  %s1108_s19 = smov 127   ;;  %s1109_s20 = smov 122  }
   0x7   :  { %1037 = vmatprep.subr.bf16.mxu1 %v1036_v19  ;;  %1041 = vmatprep.subr.bf16.mxu0 %v1040_v38  ;;  %v170_v44 = vmul.f32 0.0, %v935_v42  ;;  %v1048_v59 = vpack.c.bf16 %v394_v58, %v393_v57  ;;  %v1052_v62 = vpack.c.bf16 %v396_v61, %v395_v60  ;;  %vm521_vm14 = vcmp.eq.s32.totalorder %v1137_v4, 2  ;;  %s1110_s21 = smov 12   ;;  %s1111_s22 = smov 9  }
   0x8   :  { %vm24_vm4 = vcmp.lt.s32.totalorder %v13_v3, %v23_v9  ;;  %vm25_vm5 = vcmp.lt.s32.totalorder %v14_v7, %v23_v9  ;;  %vm26_vm7 = vcmp.lt.s32.totalorder %v15_v8, %v23_v9  ;;  %vm515_vm15 = vcmp.eq.s32.totalorder %v1137_v4, 0  ;;  %v940_v9 = vld [vmem:[%s1436_s1 + $0x58] ss:$0 sm:$0xff] }
   0x9   :  { %vm27_vm8 = vmand %vm19_vm2, %vm24_vm4  ;;  %1039 = vmatpush3.bf16.msra.mxu1 %v1036_v19  ;;  %vm518_vm0 = vcmp.eq.s32.totalorder %v1137_v4, 1  ;;  %v952_v63 = vsel %vm521_vm14, 1.0, %v1095_v10  ;;  %v1204_v1 = vsel %vm515_vm15, 1.0, %v1095_v10  ;;  %v1099_v6 = vmov 4  }
   0xa   :  { %v30_v11 = vsel %vm27_vm8, 1.0, %v1095_v10  ;;  %vm28_vm9 = vmand %vm20_vm3, %vm25_vm5  ;;  %1056 = vmatprep.subr.bf16.mxu1 %v1048_v59  ;;  %v951_v3 = vsel %vm518_vm0, 1.0, %v1095_v10  ;;  %547 = vrot.lane.b32.xlu1 %v952_v63, %s1098_s12  ;;  %v1101_v7 = vmov 5   ;;  %v1102_v8 = vmov 6  }
   0xb   :  { %985 = vmatmul.mubr.msk.f32.vlgmr.msra.gmra.mrb[0].mxu0 %vm52_vm1, %v30_v11  ;;  %v31_v12 = vsel %vm28_vm9, 1.0, %v1095_v10  ;;  %vm29_vm10 = vmand %vm21_vm6, %vm26_vm7  ;;  %v1077_v5 = vpack.i.bf16 %v951_v3, %v1204_v1  ;;  %1083 = vset.pattern.permute.xlu0 %v1099_v6  ;;  %v524_v4 = vadd.f32 %v951_v3, %v1204_v1  ;;  %v287_v11 = vmul.f32 0.0, %v940_v9 }
   0xc   :  { %987 = vmatprep.mubr.msk.f32.mxu0 %vm52_vm1, %v31_v12  ;;  %v32_v13 = vsel %vm29_vm10, 1.0, %v1095_v10  ;;  %1043 = vmatpush3.bf16.msra.mxu0 %v1040_v38  ;;  %vm826_vm4 = vcmask 7168   ;;  %vm828_vm5 = vcmask 15360   ;;  %vm902_vm6 = vcmask 31744  }
   0xd   :  { %1045 = vmatprep.subr.bf16.mxu0 %v1044_v41  ;;  %1078 = vrot.lane.b32.xlu0 %v1077_v5, %s1098_s12  ;;  %vm904_vm7 = vcmask 39936   ;;  %vm906_vm8 = vcmask 48128   ;;  %vm908_vm9 = vcmask 56320   ;;  %vm910_vm10 = vcmask 64512  }
   0xe   :  { %605 = vperm.xlu1 %1082, %v1133_v2   ;;  %vm920_vm14 = vcmask 121856   ;;  %vm922_vm15 = vcmask 146432  }
   0xf   :  { %988 = vmatmul.mubr.msk.f32.gmra.mrb[2].mxu0 %vm52_vm1, %v32_v13 }
  0x10   :  { %1047 = vmatpush3.bf16.msra.mxu0 %v1044_v41 }
  0x11   :  { %1049 = vmatprep.subr.bf16.mxu0 %v1048_v59  ;;  %609 = vperm.xlu0 %1083, %v1133_v2  }
  0x12   :  { %542 = vrot.lane.b32.xlu1 %v524_v4, %s1100_s0 }
  0x13   :  { %1084 = vset.pattern.permute.xlu1 %v1101_v7 }
  0x16   :  { %613 = vperm.xlu1 %1084, %v1133_v2  }
  0x1a   :  { %1085 = vset.pattern.permute.xlu1 %v1102_v8 }
  0x1b   :  { %617 = vperm.xlu1 %1085, %v1133_v2  }
  0x7c   :  { %v548_v36 = vpop.permute.xlu1 %547 }
  0x7f   :  { %v1079_v38 = vpop.permute.xlu0 %1078 }
  0x8d   :  { %v1237_v41 = vpop.permute.xlu1 %605 }
  0xde   :  { %v986_v21 = vpop.f32.mrb[0].mxu0 }
  0xdf   :  { %v135_v23 = vpop.f32.mrb[1].mxu0  ;;  %v141_v25 = vadd.f32 %v986_v21, %v49_v22 }
  0xe0   :  { %v136_v24 = vadd.f32 %v929_v20, %v135_v23 }
  0xe2   :  { %vm154_vm11 = vcmp.gt.f32.partialorder %v136_v24, 0.0  ;;  %v989_v26 = vpop.f32.mrb[2].mxu0 }
  0xe3   :  { %v155_v28 = vsel %vm154_vm11, 1.0, %v1096_v27  ;;  %v151_v29 = vadd.f32 %v989_v26, %v49_v22  ;;  %v145_v30 = vpop.f32.mrb[3].mxu0  ;;  %v949_v26 = vld [vmem:[%s1436_s1 + $0x80] ss:$0 sm:$0xff]  ;;  %s1105_s1 = smov 126   ;;  %vm912_vm11 = vcmask 72704  }
  0xe4   :  { %v146_v31 = vadd.f32 %v145_v30, %v49_v22  ;;  %v156_v32 = vmul.f32 %v155_v28, %v136_v24  ;;  %v157_v33 = vmul.f32 %v155_v28, %v141_v25  ;;  %v1103_v24 = vmov 7  }
  0xe5   :  { %v159_v34 = vmul.f32 %v155_v28, %v151_v29  ;;  %1086 = vset.pattern.permute.xlu0 %v1103_v24  ;;  %v1104_v25 = vmov 8  }
  0xe6   :  { %v158_v35 = vmul.f32 %v155_v28, %v146_v31  ;;  %998 = vmatprep.mubr.msk.f32.mxu1 %vm173_vm12, %v156_v32  ;;  %1087 = vset.pattern.permute.xlu1 %v1104_v25 }
  0xe7   :  { %999 = vmatmul.mubr.msk.f32.vlgmr.msra.gmra.mrb[0].mxu1 %vm173_vm12, %v157_v33  ;;  %621 = vperm.xlu0 %1086, %v1133_v2  }
  0xe8   :  { %1001 = vmatprep.mubr.msk.f32.mxu1 %vm173_vm12, %v158_v35  ;;  %1058 = vmatpush3.bf16.msra.mxu1 %v1048_v59 }
  0xe9   :  { %1057 = vmatprep.subr.bf16.mxu1 %v1052_v62  ;;  %625 = vperm.xlu1 %1087, %v1133_v2  }
  0xeb   :  { %1002 = vmatmul.mubr.msk.f32.gmra.mrb[2].mxu1 %vm173_vm12, %v159_v34  ;;  %1088 = vset.pattern.permute.xlu0 %v1104_v25 }
  0xec   :  { %1059 = vmatpush3.bf16.msra.mxu1 %v1052_v62 }
 0x1ba   :  { %v1000_v43 = vpop.f32.mrb[0].mxu1 }
 0x1bb   :  { %v252_v45 = vpop.f32.mrb[1].mxu1  ;;  %v258_v47 = vadd.f32 %v1000_v43, %v170_v44  ;;  %v1081_v43 = vunpack.i.h.bf16 %v1079_v38 }
 0x1bc   :  { %v253_v46 = vadd.f32 %v935_v42, %v252_v45 }
 0x1be   :  { %vm271_vm13 = vcmp.gt.f32.partialorder %v253_v46, 0.0  ;;  %v1003_v48 = vpop.f32.mrb[2].mxu1 }
 0x1bf   :  { %v272_v49 = vsel %vm271_vm13, 1.0, %v1096_v27  ;;  %v268_v50 = vadd.f32 %v1003_v48, %v170_v44  ;;  %v262_v51 = vpop.f32.mrb[3].mxu1  ;;  %vm916_vm13 = vcmask 89088  }
 0x1c0   :  { %v273_v52 = vmul.f32 %v272_v49, %v253_v46  ;;  %v274_v53 = vmul.f32 %v272_v49, %v258_v47  ;;  %v263_v54 = vadd.f32 %v262_v51, %v170_v44 }
 0x1c1   :  { %v276_v55 = vmul.f32 %v272_v49, %v268_v50 }
 0x1c2   :  { %v275_v56 = vmul.f32 %v272_v49, %v263_v54  ;;  %1012 = vmatprep.mubr.msk.f32.mxu0 %vm173_vm12, %v273_v52  ;;  %v1080_v49 = vunpack.i.l.bf16 %v1079_v38  ;;  %v1246_v54 = vpop.permute.xlu0 %609 }
 0x1c3   :  { %1013 = vmatmul.mubr.msk.f32.vlgmr.msra.gmra.mrb[4].mxu0 %vm173_vm12, %v274_v53  ;;  %v1244_v53 = vpop.permute.xlu1 %542 }
 0x1c4   :  { %1015 = vmatprep.mubr.msk.f32.mxu0 %vm173_vm12, %v275_v56  ;;  %1051 = vmatpush3.bf16.msra.mxu0 %v1048_v59 }
 0x1c5   :  { %1053 = vmatprep.subr.bf16.mxu0 %v1052_v62 }
 0x1c7   :  { %1016 = vmatmul.mubr.msk.f32.gmra.mrb[6].mxu0 %vm173_vm12, %v276_v55  ;;  %v1259_v63 = vpop.permute.xlu1 %613 }
 0x1c8   :  { %1055 = vmatpush3.bf16.msra.mxu0 %v1052_v62 }
 0x296   :  { %v1014_v10 = vpop.f32.mrb[4].mxu0 }
 0x297   :  { %v368_v12 = vpop.f32.mrb[5].mxu0  ;;  %v374_v14 = vadd.f32 %v1014_v10, %v287_v11 }
 0x298   :  { %v369_v13 = vadd.f32 %v940_v9, %v368_v12  ;;  %v622_v12 = vpop.permute.xlu0 %621 }
 0x29a   :  { %vm387_vm2 = vcmp.gt.f32.partialorder %v369_v13, 0.0  ;;  %v1017_v15 = vpop.f32.mrb[6].mxu0 }
 0x29b   :  { %v388_v16 = vsel %vm387_vm2, 1.0, %v1096_v27  ;;  %v384_v17 = vadd.f32 %v1017_v15, %v287_v11  ;;  %v378_v18 = vpop.f32.mrb[7].mxu0 }
 0x29c   :  { %v389_v19 = vmul.f32 %v388_v16, %v369_v13  ;;  %v390_v20 = vmul.f32 %v388_v16, %v374_v14  ;;  %v379_v21 = vadd.f32 %v378_v18, %v287_v11  ;;  %v1277_v11 = vpop.permute.xlu1 %617 }
 0x29d   :  { %v392_v22 = vmul.f32 %v388_v16, %v384_v17 }
 0x29e   :  { %v391_v23 = vmul.f32 %v388_v16, %v379_v21  ;;  %1026 = vmatprep.mubr.msk.f32.mxu0 %vm173_vm12, %v389_v19 }
 0x29f   :  { %1027 = vmatmul.mubr.msk.f32.vlgmr.msra.gmra.mrb[8].mxu0 %vm173_vm12, %v390_v20 }
 0x2a0   :  { %1029 = vmatprep.mubr.msk.f32.mxu1 %vm173_vm12, %v391_v23  ;;  %v1279_v13 = vpop.permute.xlu1 %625 }
 0x2a1   :  { %1030 = vmatmul.mubr.msk.f32.vlgmr.msra.gmra.mrb[4].mxu1 %vm173_vm12, %v392_v22  ;;  %vm914_vm12 = vcmask 80896  }
 0x372   :  { %v1228_v27 = vpop.f32.mrb[8].mxu0 }
 0x373   :  { %v476_v28 = vpop.f32.mrb[9].mxu0  ;;  %v565_v16 = vmul.f32 %v1228_v27, %v1244_v53  ;;  %v558_v17 = vmul.f32 %v1228_v27, %v1204_v1 }
 0x374   :  { %v1230_v29 = vadd.f32 %v949_v26, %v476_v28  ;;  %v1232_v30 = vpop.f32.mrb[4].mxu1 }
 0x375   :  { %v1234_v31 = vpop.f32.mrb[5].mxu1  ;;  %v597_v26 = vmul.f32 %v1232_v30, %v1244_v53  ;;  %v590_v28 = vmul.f32 %v1232_v30, %v1204_v1 }
 0x376   :  { %v500_v32 = vand.u32 2147483647, %v1230_v29  ;;  %vm512_vm3 = vcmp.ge.f32.partialorder %v1230_v29, 0.0  ;;  %v507_v45 = vmax.f32 %v1230_v29, 0.0  ;;  %v574_v18 = vmul.f32 %v1204_v1, %v1234_v31 }
 0x377   :  { %v581_v19 = vmul.f32 %v1244_v53, %v1234_v31 }
 0x378   :  { %v501_v33 = vsub.f32 0.0, %v500_v32 }
 0x37a   :  { %v502_v34 = vmul.f32 1.442695, %v501_v33 }
 0x37c   :  { %1089 = vpow2.f32 %v502_v34 }
 0x386   :  { %v1090_v2 = vpop.eup %1089 }
 0x387   :  { %v504_v35 = vadd.f32 1.0, %v1090_v2 }
 0x389   :  { %1091 = vlog2.f32 %v504_v35 }
 0x38a   :  { %1093 = vrcp.f32 %v504_v35 }
 0x393   :  { %v1092_v37 = vpop.eup %1091 }
 0x394   :  { %v1094_v39 = vpop.eup %1093  ;;  %v509_v42 = vmul.f32 0.6931472, %v1092_v37 }
 0x395   :  { %v513_v40 = vmul.f32 %v1094_v39, %v1090_v2 }
 0x396   :  { %v510_v50 = vadd.f32 %v509_v42, %v507_v45 }
 0x397   :  { %v514_v44 = vsel %vm512_vm3, %v1094_v39, %v513_v40 }
 0x398   :  { %v556_v46 = vmul.f32 %v1228_v27, %v514_v44  ;;  %v588_v47 = vmul.f32 %v1232_v30, %v514_v44  ;;  %v572_v48 = vmul.f32 %v514_v44, %v1234_v31  ;;  %v511_v58 = vadd.f32 0.1, %v510_v50 }
 0x399   :  { %v530_v30 = vmul.f32 %v1204_v1, %v1230_v29 }
 0x39a   :  { %v566_v51 = vmul.f32 %v556_v46, %v548_v36  ;;  %v559_v52 = vmul.f32 %v1081_v43, %v556_v46  ;;  %v1250_v55 = vmul.f32 %v1080_v49, %v572_v48  ;;  %v557_v56 = vmul.f32 %v1080_v49, %v556_v46 }
 0x39b   :  { %v1252_v57 = vmul.f32 %v1080_v49, %v588_v47  ;;  %v582_v59 = vmul.f32 %v572_v48, %v548_v36  ;;  %v575_v60 = vmul.f32 %v1081_v43, %v572_v48  ;;  %v1266_v5 = vmul.f32 %v1080_v49, %v511_v58 }
 0x39c   :  { %568 = vrot.lane.b32.xlu0 %v566_v51, %s1105_s1  ;;  %561 = vrot.lane.b32.xlu1 %v559_v52, %s1106_s17  ;;  %v629_v61 = vmul.f32 %v1246_v54, %v1250_v55  ;;  %v1257_v62 = vmul.f32 %v1237_v41, %v557_v56  ;;  %v598_v6 = vmul.f32 %v588_v47, %v548_v36 }
 0x39d   :  { %v631_v3 = vmul.f32 %v1259_v63, %v1252_v57  ;;  %v591_v4 = vmul.f32 %v1081_v43, %v588_v47  ;;  %v535_v8 = vmul.f32 %v1081_v43, %v511_v58  ;;  %v718_v9 = vmul.f32 %v1266_v5, %v1266_v5 }
 0x39e   :  { %v630_v0 = vadd.f32 %v629_v61, %v1257_v62  ;;  %v550_v10 = vmul.f32 %v548_v36, %v511_v58  ;;  %v545_v46 = vmul.f32 %v1244_v53, %v1230_v29 }
 0x3a0   :  { %584 = vrot.lane.b32.xlu0 %v582_v59, %s1105_s1  ;;  %577 = vrot.lane.b32.xlu1 %v575_v60, %s1106_s17  ;;  %v1268_v7 = vadd.f32 %v631_v3, %v630_v0 }
 0x3a4   :  { %600 = vrot.lane.b32.xlu0 %v598_v6, %s1105_s1  ;;  %593 = vrot.lane.b32.xlu1 %v591_v4, %s1106_s17 }
 0x3a8   :  { %537 = vrot.lane.b32.xlu0 %v535_v8, %s1106_s17  ;;  %720 = vrot.lane.b32.xlu1 %v718_v9, %s1106_s17 }
 0x3ac   :  { %552 = vrot.lane.b32.xlu0 %v550_v10, %s1105_s1 }
 0x40e   :  { %v569_v14 = vpop.permute.xlu0 %568  ;;  %v562_v15 = vpop.permute.xlu1 %561 }
 0x40f   :  { %v571_v20 = vadd.f32 %v569_v14, %v565_v16  ;;  %v564_v21 = vadd.f32 %v562_v15, %v558_v17  ;;  %v694_v14 = vmul.f32 %v1237_v41, %v1250_v55  ;;  %v706_v16 = vmul.f32 %v1237_v41, %v1252_v57 }
 0x411   :  { %v638_v27 = vmul.f32 %v1237_v41, %v571_v20  ;;  %v633_v32 = vmul.f32 %v1237_v41, %v564_v21  ;;  %v682_v48 = vmul.f32 %v1246_v54, %v564_v21  ;;  %v688_v1 = vmul.f32 %v1259_v63, %v571_v20 }
 0x412   :  { %v585_v22 = vpop.permute.xlu0 %584  ;;  %v578_v23 = vpop.permute.xlu1 %577  ;;  %v669_v20 = vmul.f32 %v1277_v11, %v1266_v5  ;;  %v643_v11 = vmul.f32 %v1237_v41, %v1266_v5 }
 0x413   :  { %v587_v24 = vadd.f32 %v585_v22, %v581_v19  ;;  %v580_v25 = vadd.f32 %v578_v23, %v574_v18 }
 0x415   :  { %v639_v33 = vmul.f32 %v1246_v54, %v587_v24  ;;  %v634_v31 = vmul.f32 %v1246_v54, %v580_v25  ;;  %v700_v51 = vmul.f32 %v1259_v63, %v587_v24 }
 0x416   :  { %v601_v34 = vpop.permute.xlu0 %600  ;;  %v594_v2 = vpop.permute.xlu1 %593 }
 0x417   :  { %v640_v35 = vadd.f32 %v639_v33, %v638_v27  ;;  %v635_v36 = vadd.f32 %v634_v31, %v633_v32  ;;  %v603_v37 = vadd.f32 %v601_v34, %v597_v26  ;;  %v596_v38 = vadd.f32 %v594_v2, %v590_v28 }
 0x419   :  { %v641_v39 = vmul.f32 %v1259_v63, %v603_v37  ;;  %v636_v40 = vmul.f32 %v1259_v63, %v596_v38  ;;  %v707_v50 = vmul.f32 %v1246_v54, %v596_v38 }
 0x41a   :  { %v538_v42 = vpop.permute.xlu0 %537  ;;  %v721_v58 = vpop.permute.xlu1 %720 }
 0x41b   :  { %v1301_v43 = vadd.f32 %v641_v39, %v640_v35  ;;  %v1303_v44 = vadd.f32 %v636_v40, %v635_v36  ;;  %v1305_v45 = vadd.f32 %v538_v42, %v530_v30  ;;  %v723_v59 = vsel %vm52_vm1, %v721_v58, 0.0 }
 0x41d   :  { %727 = vrot.lane.b32.xlu1 %v1305_v45, %s1098_s12  ;;  %v644_v52 = vmul.f32 %v1246_v54, %v1305_v45  ;;  %v670_v53 = vmul.f32 %v622_v12, %v1305_v45  ;;  %v750_v60 = vmul.f32 %v1305_v45, %v1305_v45  ;;  %v657_v3 = vmul.f32 %v1303_v44, %v1246_v54 }
 0x41e   :  { %v553_v47 = vpop.permute.xlu0 %552  ;;  %v663_v4 = vmul.f32 %v1301_v43, %v1259_v63 }
 0x41f   :  { %v1312_v49 = vadd.f32 %v553_v47, %v545_v46  ;;  %v751_v61 = vsel %vm52_vm1, %v750_v60, 0.0  ;;  %v656_v47 = vmul.f32 %v1268_v7, %v1237_v41 }
 0x421   :  { %739 = vrot.lane.b32.xlu0 %v1312_v49, %s1107_s18  ;;  %684 = vrot.lane.b32.xlu1 %v682_v48, %s1098_s12  ;;  %v761_v56 = vmul.f32 %v1312_v49, %v1312_v49  ;;  %v650_v0 = vmul.f32 %v1259_v63, %v1312_v49  ;;  %v676_v6 = vmul.f32 %v1279_v13, %v1312_v49 }
 0x425   :  { %754 = vrot.lane.b32.xlu0 %v1312_v49, %s1108_s19  ;;  %696 = vrot.lane.b32.xlu1 %v634_v31, %s1098_s12 }
 0x429   :  { %690 = vrot.lane.b32.xlu0 %v688_v1, %s1107_s18  ;;  %709 = vrot.lane.b32.xlu1 %v707_v50, %s1098_s12 }
 0x42d   :  { %702 = vrot.lane.b32.xlu0 %v700_v51, %s1107_s18  ;;  %646 = vrot.lane.b32.xlu1 %v644_v52, %s1098_s12 }
 0x431   :  { %714 = vrot.lane.b32.xlu0 %v641_v39, %s1107_s18  ;;  %672 = vrot.lane.b32.xlu1 %v670_v53, %s1098_s12 }
 0x435   :  { %763 = vrot.lane.b32.xlu1 %v761_v56, %s1108_s19 }
 0x450   :  { %724 = vadd.xlane.f32.xlu0 %v723_v59 }
 0x459   :  { %752 = vadd.xlane.f32.xlu1 %v751_v61 }
 0x466   :  { %652 = vrot.lane.b32.xlu0 %v650_v0, %s1107_s18 }
 0x46a   :  { %659 = vrot.lane.b32.xlu1 %v657_v3, %s1098_s12  ;;  %678 = vrot.lane.b32.xlu0 %v676_v6, %s1107_s18 }
 0x46e   :  { %665 = vrot.lane.b32.xlu0 %v663_v4, %s1107_s18 }
 0x48f   :  { %v728_v8 = vpop.permute.xlu1 %727 }
 0x490   :  { %v730_v9 = vmul.f32 %v728_v8, %v1266_v5 }
 0x492   :  { %732 = vrot.lane.b32.xlu1 %v730_v9, %s1106_s17 }
 0x493   :  { %v740_v10 = vpop.permute.xlu0 %739  ;;  %v685_v12 = vpop.permute.xlu1 %684 }
 0x494   :  { %v742_v54 = vmul.f32 %v740_v10, %v1266_v5  ;;  %v687_v13 = vadd.f32 %v685_v12, %v1257_v62 }
 0x496   :  { %744 = vrot.lane.b32.xlu1 %v742_v54, %s1106_s17 }
 0x497   :  { %v697_v15 = vpop.permute.xlu1 %696  ;;  %v755_v24 = vpop.permute.xlu0 %754 }
 0x498   :  { %v699_v63 = vadd.f32 %v697_v15, %v694_v14  ;;  %v757_v55 = vmul.f32 %v755_v24, %v1305_v45 }
 0x49a   :  { %v758_v25 = vsel %vm52_vm1, %v757_v55, 0.0 }
 0x49b   :  { %v710_v17 = vpop.permute.xlu1 %709  ;;  %v691_v26 = vpop.permute.xlu0 %690 }
 0x49c   :  { %v712_v18 = vadd.f32 %v710_v17, %v706_v16  ;;  %v693_v31 = vadd.f32 %v691_v26, %v687_v13 }
 0x49f   :  { %v647_v19 = vpop.permute.xlu1 %646  ;;  %v703_v57 = vpop.permute.xlu0 %702 }
 0x4a0   :  { %v649_v32 = vadd.f32 %v647_v19, %v643_v11  ;;  %v705_v34 = vadd.f32 %v703_v57, %v699_v63 }
 0x4a3   :  { %v673_v21 = vpop.permute.xlu1 %672  ;;  %v715_v28 = vpop.permute.xlu0 %714 }
 0x4a4   :  { %v675_v22 = vadd.f32 %v673_v21, %v669_v20  ;;  %v717_v2 = vadd.f32 %v715_v28, %v712_v18 }
 0x4a7   :  { %v764_v23 = vpop.permute.xlu1 %763 }
 0x4a8   :  { %v766_v62 = vsel %vm52_vm1, %v764_v23, 0.0 }
 0x4a9   :  { %767 = vadd.xlane.f32.xlu0 %v766_v62 }
 0x4ba   :  { %759 = vadd.xlane.f32.xlu1 %v758_v25 }
 0x4dd   :  { %v1365_v27 = vpop.xlane.xlu0 %724 }
 0x4e1   :  { %v653_v33 = vpop.permute.xlu0 %652 }
 0x4e2   :  { %v655_v35 = vadd.f32 %v653_v33, %v649_v32 }
 0x4e4   :  { %795 = vrot.lane.b32.xlu0 %v655_v35, %s1106_s17  ;;  %v859_v36 = vmul.f32 %v693_v31, %v655_v35  ;;  %v777_v37 = vmul.f32 %v655_v35, %v1268_v7  ;;  %v867_v38 = vmul.f32 %v705_v34, %v655_v35  ;;  %v875_v39 = vmul.f32 %v717_v2, %v655_v35 }
 0x4e5   :  { %v679_v40 = vpop.permute.xlu0 %678 }
 0x4e6   :  { %v681_v30 = vadd.f32 %v679_v40, %v675_v22  ;;  %v1371_v42 = vpop.xlane.xlu1 %752  ;;  %861 = vrot.lane.b32.xlu1 %v859_v36, %s1106_s17 }
 0x4e8   :  { %814 = vrot.lane.b32.xlu0 %v655_v35, %s1105_s1  ;;  %v830_v46 = vmul.f32 %v681_v30, %v1266_v5 }
 0x4e9   :  { %v666_v50 = vpop.permute.xlu0 %665 }
 0x4ea   :  { %v660_v48 = vpop.permute.xlu1 %659  ;;  %832 = vrot.lane.b32.xlu1 %v830_v46, %s1106_s17 }
 0x4eb   :  { %v662_v1 = vadd.f32 %v660_v48, %v656_v47 }
 0x4ec   :  { %846 = vrot.lane.b32.xlu0 %v681_v30, %s1105_s1 }
 0x4ed   :  { %v668_v51 = vadd.f32 %v666_v50, %v662_v1 }
 0x4ef   :  { %803 = vrot.lane.b32.xlu1 %v668_v51, %s1105_s1  ;;  %v769_v52 = vmul.f32 %v668_v51, %v1266_v5 }
 0x4f0   :  { %779 = vrot.lane.b32.xlu0 %v777_v37, %s1106_s17 }
 0x4f3   :  { %771 = vrot.lane.b32.xlu1 %v769_v52, %s1106_s17 }
 0x4f4   :  { %869 = vrot.lane.b32.xlu0 %v867_v38, %s1106_s17 }
 0x4f8   :  { %877 = vrot.lane.b32.xlu0 %v875_v39, %s1106_s17 }
 0x4fc   :  { %787 = vrot.lane.b32.xlu0 %v668_v51, %s1106_s17 }
 0x504   :  { %v733_v41 = vpop.permute.xlu1 %732 }
 0x505   :  { %v735_v7 = vsel %vm52_vm1, %v733_v41, 0.0 }
 0x508   :  { %v745_v53 = vpop.permute.xlu1 %744 }
 0x509   :  { %v747_v56 = vsel %vm52_vm1, %v745_v53, 0.0 }
 0x517   :  { %736 = vadd.xlane.f32.xlu1 %v735_v7 }
 0x51b   :  { %748 = vadd.xlane.f32.xlu0 %v747_v56 }
 0x536   :  { %v1389_v58 = vpop.xlane.xlu0 %767 }
 0x547   :  { %v1393_v0 = vpop.xlane.xlu1 %759 }
 0x556   :  { %v796_v59 = vpop.permute.xlu0 %795 }
 0x557   :  { %v798_v12 = vmul.f32 %v796_v59, %v1303_v44 }
 0x558   :  { %v862_v4 = vpop.permute.xlu1 %861 }
 0x559   :  { %v864_v14 = vsel %vm52_vm1, %v862_v4, 0.0 }
 0x55a   :  { %v815_v5 = vpop.permute.xlu0 %814 }
 0x55b   :  { %v817_v60 = vmul.f32 %v815_v5, %v1301_v43  ;;  %v799_v43 = vsel %vm52_vm1, %v798_v12, 0.0 }
 0x55c   :  { %v833_v8 = vpop.permute.xlu1 %832 }
 0x55d   :  { %819 = vrot.lane.b32.xlu0 %v817_v60, %s1108_s19  ;;  %v835_v54 = vsel %vm52_vm1, %v833_v8, 0.0 }
 0x55e   :  { %v847_v61 = vpop.permute.xlu0 %846 }
 0x55f   :  { %v849_v13 = vmul.f32 %v847_v61, %v1312_v49 }
 0x561   :  { %v804_v9 = vpop.permute.xlu1 %803 }
 0x562   :  { %v780_v3 = vpop.permute.xlu0 %779  ;;  %v806_v10 = vmul.f32 %v804_v9, %v1312_v49 }
 0x563   :  { %v782_v6 = vsel %vm52_vm1, %v780_v3, 0.0 }
 0x564   :  { %783 = vadd.xlane.f32.xlu1 %v782_v6 }
 0x565   :  { %v772_v17 = vpop.permute.xlu1 %771 }
 0x566   :  { %v870_v15 = vpop.permute.xlu0 %869  ;;  %v774_v19 = vsel %vm52_vm1, %v772_v17, 0.0 }
 0x567   :  { %v872_v25 = vsel %vm52_vm1, %v870_v15, 0.0 }
 0x56a   :  { %v878_v63 = vpop.permute.xlu0 %877 }
 0x56b   :  { %v880_v22 = vsel %vm52_vm1, %v878_v63, 0.0 }
 0x56e   :  { %v788_v16 = vpop.permute.xlu0 %787 }
 0x56f   :  { %v790_v18 = vmul.f32 %v788_v16, %v1305_v45 }
 0x571   :  { %v791_v49 = vsel %vm52_vm1, %v790_v18, 0.0 }
 0x575   :  { %808 = vrot.lane.b32.xlu1 %v806_v10, %s1108_s19 }
 0x57c   :  { %800 = vadd.xlane.f32.xlu0 %v799_v43 }
 0x592   :  { %839 = vrot.lane.b32.xlu0 %v681_v30, %s1106_s17 }
 0x599   :  { %836 = vadd.xlane.f32.xlu1 %v835_v54 }
 0x5a4   :  { %v737_v23 = vpop.xlane.xlu1 %736 }
 0x5a8   :  { %v1405_v44 = vpop.xlane.xlu0 %748 }
 0x5aa   :  { %851 = vrot.lane.b32.xlu1 %v849_v13, %s1108_s19 }
 0x5b1   :  { %865 = vadd.xlane.f32.xlu0 %v864_v14 }
 0x5ce   :  { %775 = vadd.xlane.f32.xlu1 %v774_v19 }
 0x5cf   :  { %v820_v20 = vpop.permute.xlu0 %819 }
 0x5d0   :  { %v822_v21 = vsel %vm52_vm1, %v820_v20, 0.0 }
 0x5d1   :  { %823 = vadd.xlane.f32.xlu0 %v822_v21 }
 0x5d2   :  { %792 = vadd.xlane.f32.xlu1 %v791_v49 }
 0x5d5   :  { %881 = vadd.xlane.f32.xlu0 %v880_v22 }
 0x5f1   :  { %v784_v62 = vpop.xlane.xlu1 %783 }
 0x5f5   :  { %v809_v24 = vpop.permute.xlu1 %808 }
 0x5f6   :  { %v811_v55 = vsel %vm52_vm1, %v809_v24, 0.0 }
 0x5f7   :  { %812 = vadd.xlane.f32.xlu1 %v811_v55 }
 0x5fb   :  { %873 = vadd.xlane.f32.xlu1 %v872_v25 }
 0x609   :  { %v801_v26 = vpop.xlane.xlu0 %800 }
 0x60d   :  { %v840_v57 = vpop.permute.xlu0 %839 }
 0x60e   :  { %v842_v28 = vmul.f32 %v840_v57, %v1305_v45 }
 0x610   :  { %v843_v11 = vsel %vm52_vm1, %v842_v28, 0.0 }
 0x611   :  { %844 = vadd.xlane.f32.xlu0 %v843_v11 }
 0x626   :  { %v837_v32 = vpop.xlane.xlu1 %836 }
 0x62a   :  { %v852_v33 = vpop.permute.xlu1 %851 }
 0x62b   :  { %v854_v31 = vsel %vm52_vm1, %v852_v33, 0.0 }
 0x62c   :  { %855 = vadd.xlane.f32.xlu0 %v854_v31 }
 0x63e   :  { %v866_v2 = vpop.xlane.xlu0 %865 }
 0x642   :  { %890 = vrot.lane.b32.xlu0 %v1230_v29, %s1109_s20 }
 0x65b   :  { %v776_v34 = vpop.xlane.xlu1 %775 }
 0x65c   :  { %v785_v47 = vadd.f32 %v784_v62, %v776_v34 }
 0x65e   :  { %v824_v36 = vpop.xlane.xlu0 %823 }
 0x65f   :  { %v793_v35 = vpop.xlane.xlu1 %792 }
 0x660   :  { %v802_v39 = vadd.f32 %v801_v26, %v793_v35 }
 0x662   :  { %v882_v45 = vpop.xlane.xlu0 %881  ;;  %v827_v1 = vsel %vm826_vm4, %v785_v47, %v802_v39 }
 0x684   :  { %v813_v37 = vpop.xlane.xlu1 %812 }
 0x685   :  { %v825_v30 = vadd.f32 %v824_v36, %v813_v37 }
 0x687   :  { %v829_v51 = vsel %vm828_vm5, %v827_v1, %v825_v30 }
 0x688   :  { %v874_v38 = vpop.xlane.xlu1 %873 }
 0x689   :  { %v883_v40 = vsel %vm826_vm4, %v866_v2, %v874_v38 }
 0x68a   :  { %v884_v46 = vsel %vm828_vm5, %v883_v40, %v882_v45 }
 0x68b   :  { %v885_v48 = vmul.f32 2.0, %v884_v46 }
 0x68d   :  { %v886_v50 = vmul.f32 0.5, %v885_v48 }
 0x68f   :  { %v887_v52 = vsub.f32 %v829_v51, %v886_v50 }
 0x691   :  { %895 = vrot.lane.b32.xlu1 %v887_v52, %s1110_s21 }
 0x695   :  { %898 = vrot.lane.b32.xlu1 %v1230_v29, %s1111_s22 }
 0x69e   :  { %v845_v41 = vpop.xlane.xlu0 %844 }
 0x69f   :  { %v857_v7 = vsel %vm826_vm4, %v837_v32, %v845_v41 }
 0x6b9   :  { %v856_v53 = vpop.xlane.xlu0 %855 }
 0x6ba   :  { %v858_v56 = vsel %vm828_vm5, %v857_v7, %v856_v53 }
 0x6bb   :  { %v888_v59 = vadd.f32 %v887_v52, %v858_v56 }
 0x6bd   :  { %v891_v5 = vpop.permute.xlu0 %890 }
 0x6be   :  { %v893_v60 = vadd.f32 %v891_v5, %v888_v59 }
 0x6c0   :  { %v901_v61 = vsel %vm52_vm1, %v893_v60, %v1365_v27  ;;  %vm918_vm1 = vcmask 97280  }
 0x6c1   :  { %v903_v3 = vsel %vm902_vm6, %v901_v61, %v737_v23 }
 0x6c2   :  { %v905_v6 = vsel %vm904_vm7, %v903_v3, %v1405_v44 }
 0x6c3   :  { %v907_v4 = vsel %vm906_vm8, %v905_v6, %v737_v23 }
 0x6c4   :  { %v909_v29 = vsel %vm908_vm9, %v907_v4, %v1371_v42 }
 0x6c5   :  { %v911_v8 = vsel %vm910_vm10, %v909_v29, %v1393_v0 }
 0x6c6   :  { %v913_v9 = vsel %vm912_vm11, %v911_v8, %v1405_v44 }
 0x6c7   :  { %v915_v27 = vsel %vm914_vm12, %v913_v9, %v1393_v0 }
 0x6c8   :  { %v917_v12 = vsel %vm916_vm13, %v915_v27, %v1389_v58 }
 0x703   :  { %v896_v10 = vpop.permute.xlu1 %895 }
 0x704   :  { %v919_v43 = vsel %vm918_vm1, %v917_v12, %v896_v10 }
 0x707   :  { %v899_v54 = vpop.permute.xlu1 %898 }
 0x708   :  { %v921_v13 = vsel %vm920_vm14, %v919_v43, %v899_v54 }
 0x709   :  { %v923_v14 = vsel %vm922_vm15, %v921_v13, 0.0 }
 0x70a   :  { %924 = vst [vmem:[%s1438_s2] sm:$0xff] %v923_v14 }

</bundles_post_ra>
